<compile_context>
chip_gen: v5e
topology: v5e:2x2
jax: 0.10.0
libtpu: 0.0.40
codegen_flags: <defaults>
</compile_context>

<pallas_src>
import functools

import jax
import jax.numpy as jnp
import numpy as np
from jax.experimental import pallas as pl
from jax.experimental.pallas import tpu as pltpu


def _pathway_kernel(x_ref, w1_ref, w4_ref, p_ref, *, node_num):
    # x_ref: (F, TILE_B)  w1_ref: (P*H, F)  w4_ref: (P, P*H)  p_ref: (P, TILE_B)
    # fc1 for all pathways: one block-diagonal matmul (batch on lanes).
    s = jnp.dot(w1_ref[...], x_ref[...], preferred_element_type=jnp.float32)

    # leaky_relu(0.2) on every pathway block except pathway 0 (rows < H),
    # fused into a single compare+select.
    row = jax.lax.broadcasted_iota(jnp.int32, s.shape, 0)
    s = jnp.where((row >= node_num) & (s < 0.0), 0.2 * s, s)

    # fc4 for all pathways: block-diagonal matmul down to one value/pathway,
    # leaky_relu(0.2) on every pathway except pathway 0 (row 0).
    p = jnp.dot(w4_ref[...], s, preferred_element_type=jnp.float32)
    prow = jax.lax.broadcasted_iota(jnp.int32, p.shape, 0)
    p_ref[...] = jnp.where((prow >= 1) & (p < 0.0), 0.2 * p, p)


def _head_kernel(p_ref, gamma_ref, beta_ref, w2_ref, b2_ref, o_ref):
    # p_ref: (P, B)  gamma/beta: (P, 1)  w2: (1, P)  b2: SMEM (1, 1)  o: (1, B)
    p = p_ref[...]

    # BatchNorm1d(len(nvar)) in training mode: biased batch statistics over
    # the batch (lane) axis.
    mean = jnp.mean(p, axis=1, keepdims=True)
    var = jnp.mean((p - mean) ** 2, axis=1, keepdims=True)
    p_bn = (p - mean) * jax.lax.rsqrt(var + 1e-5) * gamma_ref[...] + beta_ref[...]

    # x / (||x||_2 + 1e-8): global Frobenius norm; divide via EUP reciprocal.
    sq = jnp.sum(p_bn * p_bn, keepdims=True)                  # (1, 1)
    inv = pl.reciprocal(jnp.sqrt(sq) + 1e-8, approx=False)    # (1, 1)
    p_n = p_bn * inv

    # fc2 (Linear(P, 1) with bias) + sigmoid, emitted lane-dense as (1, B).
    logits = jnp.dot(w2_ref[...], p_n, preferred_element_type=jnp.float32)
    o_ref[...] = jax.nn.sigmoid(logits + b2_ref[0, 0])


def deephiscom_forward(x, w1_bd, w4_bd, gamma, beta, w2, b2, *, node_num):
    """x: (B, F); w1_bd: (F, P*H) block-diag; w4_bd: (P*H, P) block-diag;
    gamma/beta: (1, P); w2: (1, P); b2: (1, 1).  Returns (B, 1) sigmoid probs."""
    B, F = x.shape
    PH = w1_bd.shape[1]
    P = w4_bd.shape[1]

    # Batch-on-lanes layout (cheap one-time transposes outside the kernel;
    # in production the parameters would be stored pre-transposed).
    x_t = x.T                      # (F, B)
    w1_t = w1_bd.T                 # (P*H, F)
    w4_t = w4_bd.T                 # (P, P*H)
    gamma_c = gamma.reshape(P, 1)
    beta_c = beta.reshape(P, 1)

    # Batch tile: the lane dim of a block must be a multiple of 128 or equal
    # the full batch.  At realistic batch sizes this pipelines (F, tile) tiles.
    if B % 256 == 0:
        tile_b = 256
    elif B % 128 == 0:
        tile_b = 128
    else:
        tile_b = B
    grid = (B // tile_b,)

    # NOTE: at realistic pathway counts the dense block-diagonal weights should
    # be replaced by a grid over pathways with scalar-prefetched nvar offsets
    # (PrefetchScalarGridSpec); kept dense here for the toy problem size.
    p_t = pl.pallas_call(
        functools.partial(_pathway_kernel, node_num=node_num),
        out_shape=jax.ShapeDtypeStruct((P, B), jnp.float32),
        grid=grid,
        in_specs=[
            pl.BlockSpec((F, tile_b), lambda i: (0, i)),    # x^T batch tile
            pl.BlockSpec((PH, F), lambda i: (0, 0)),        # fc1 weights, resident
            pl.BlockSpec((P, PH), lambda i: (0, 0)),        # fc4 weights, resident
        ],
        out_specs=pl.BlockSpec((P, tile_b), lambda i: (0, i)),
        compiler_params=pltpu.CompilerParams(
            dimension_semantics=("parallel",),              # dual-TC on v7x
            vmem_limit_bytes=32 * 1024 * 1024,              # safe on 64MiB v7x
        ),
    )(x_t, w1_t, w4_t)

    out_row = pl.pallas_call(
        _head_kernel,
        out_shape=jax.ShapeDtypeStruct((1, B), jnp.float32),
        in_specs=[
            pl.BlockSpec(memory_space=pltpu.MemorySpace.VMEM),   # p (P, B)
            pl.BlockSpec(memory_space=pltpu.MemorySpace.VMEM),   # gamma (P, 1)
            pl.BlockSpec(memory_space=pltpu.MemorySpace.VMEM),   # beta  (P, 1)
            pl.BlockSpec(memory_space=pltpu.MemorySpace.VMEM),   # w2    (1, P)
            pl.BlockSpec(memory_space=pltpu.MemorySpace.SMEM),   # b2 scalar
        ],
        out_specs=pl.BlockSpec(memory_space=pltpu.MemorySpace.VMEM),
    )(p_t, gamma_c, beta_c, w2, b2)

    return out_row.T               # (B, 1)


def _reference(x, w1_list, w4_list, gamma, beta, w2, b2, nvar):
    # Pure-JAX replica of the PyTorch forward (training-mode BatchNorm).
    s, off = [], 0
    for i, n in enumerate(nvar):
        t = x[:, off:off + n]
        off += n
        v = t @ w1_list[i].T
        if i > 0:
            v = jnp.where(v >= 0, v, 0.2 * v)
        s.append(v)
    outs = []
    for i, wi in enumerate(w4_list):
        v = s[i] @ wi.T
        if i > 0:
            v = jnp.where(v >= 0, v, 0.2 * v)
        outs.append(v)
    p = jnp.concatenate(outs, axis=1)
    mean = p.mean(0, keepdims=True)
    var = ((p - mean) ** 2).mean(0, keepdims=True)
    p_bn = (p - mean) / jnp.sqrt(var + 1e-5) * gamma + beta
    p_n = p_bn / (jnp.sqrt(jnp.sum(p_bn ** 2)) + 1e-8)
    return jax.nn.sigmoid(p_n @ w2.T + b2)


if __name__ == "__main__":
    nvar = [4, 6, 3, 5]          # per-pathway variable counts
    node_num = 16                # hidden nodes per pathway
    P = len(nvar)
    F = sum(nvar)
    B = 8

    key = jax.random.PRNGKey(0)
    keys = jax.random.split(key, 2 * P + 3)

    # Deterministic parameter init (PyTorch Linear default: U(-1/sqrt(in), 1/sqrt(in))).
    w1_list = []
    for i, n in enumerate(nvar):
        bound = 1.0 / np.sqrt(n)
        w1_list.append(jax.random.uniform(keys[i], (node_num, n), jnp.float32,
                                          -bound, bound))
    w4_list = []
    bound4 = 1.0 / np.sqrt(node_num)
    for i in range(P):
        w4_list.append(jax.random.uniform(keys[P + i], (1, node_num), jnp.float32,
                                          -bound4, bound4))
    gamma = jnp.ones((1, P), jnp.float32)          # BatchNorm weight
    beta = jnp.zeros((1, P), jnp.float32)          # BatchNorm bias
    bound2 = 1.0 / np.sqrt(P)
    w2 = jax.random.uniform(keys[2 * P], (1, P), jnp.float32, -bound2, bound2)
    b2 = jax.random.uniform(keys[2 * P + 1], (1, 1), jnp.float32, -bound2, bound2)

    # Pack fc1 weights into block-diagonal (F, P*H) and fc4 into (P*H, P).
    w1_bd = jnp.zeros((F, P * node_num), jnp.float32)
    w4_bd = jnp.zeros((P * node_num, P), jnp.float32)
    off = 0
    for i, n in enumerate(nvar):
        w1_bd = w1_bd.at[off:off + n, i * node_num:(i + 1) * node_num].set(
            w1_list[i].T)
        w4_bd = w4_bd.at[i * node_num:(i + 1) * node_num, i].set(w4_list[i][0])
        off += n

    x = jax.random.normal(keys[2 * P + 2], (B, F), jnp.float32)

    out = deephiscom_forward(x, w1_bd, w4_bd, gamma, beta, w2, b2,
                             node_num=node_num)
    out = jax.block_until_ready(out)

    ref = _reference(x, w1_list, w4_list, gamma, beta, w2, b2, nvar)
    ref = jax.block_until_ready(ref)

    assert out.shape == (B, 1)
    np.testing.assert_allclose(np.asarray(out), np.asarray(ref),
                               rtol=1e-4, atol=1e-5)
    print("KERNEL_OK")
</pallas_src>

<mosaic_0001>
module attributes {stable_mosaic.version = 11 : i64} {
  func.func @_pathway_kernel(%arg0: i32, %arg1: memref<18x8xf32, #tpu.memory_space<vmem>>, %arg2: memref<64x18xf32, #tpu.memory_space<vmem>>, %arg3: memref<4x64xf32, #tpu.memory_space<vmem>>, %arg4: memref<4x8xf32, #tpu.memory_space<vmem>>) attributes {dimension_semantics = [#tpu.dimension_semantics<parallel>], iteration_bounds = array<i64: 1>, scalar_prefetch = 0 : i64, scratch_operands = 0 : i64, tpu.core_type = #tpu.core_type<tc>, window_params = [{transform_indices = @transform_0, window_bounds = array<i64: 18, 8>}, {pipeline_mode = #tpu.pipeline_mode<synchronous>, transform_indices = @transform_1, window_bounds = array<i64: 64, 18>}, {pipeline_mode = #tpu.pipeline_mode<synchronous>, transform_indices = @transform_2, window_bounds = array<i64: 4, 64>}, {transform_indices = @transform_3, window_bounds = array<i64: 4, 8>}]} {
    %c0 = arith.constant 0 : index
    %c0_0 = arith.constant 0 : index
    %0 = vector.load %arg2[%c0, %c0_0] : memref<64x18xf32, #tpu.memory_space<vmem>>, vector<64x18xf32>
    %c0_1 = arith.constant 0 : index
    %c0_2 = arith.constant 0 : index
    %1 = vector.load %arg1[%c0_1, %c0_2] : memref<18x8xf32, #tpu.memory_space<vmem>>, vector<18x8xf32>
    %cst = arith.constant dense<0.000000e+00> : vector<64x8xf32>
    %2 = tpu.matmul %0, %1, %cst {dimension_numbers = #tpu.dot_dimension_numbers<[1], [0], [0], [1], [0, 0, 1, 1], [], []>} : vector<64x18xf32>, vector<18x8xf32>, vector<64x8xf32> -> vector<64x8xf32>
    %3 = tpu.iota {dimensions = array<i32: 0>} : vector<64x8xi32>
    %c16_i32 = arith.constant 16 : i32
    %4 = vector.broadcast %c16_i32 : i32 to vector<64x8xi32>
    %5 = arith.cmpi sge, %3, %4 : vector<64x8xi32>
    %cst_3 = arith.constant 0.000000e+00 : f32
    %6 = vector.broadcast %cst_3 : f32 to vector<64x8xf32>
    %7 = arith.cmpf olt, %2, %6 : vector<64x8xf32>
    %8 = arith.andi %5, %7 : vector<64x8xi1>
    %cst_4 = arith.constant 2.000000e-01 : f32
    %9 = vector.broadcast %cst_4 : f32 to vector<64x8xf32>
    %10 = arith.mulf %9, %2 : vector<64x8xf32>
    %11 = arith.select %8, %10, %2 : vector<64x8xi1>, vector<64x8xf32>
    %c0_5 = arith.constant 0 : index
    %c0_6 = arith.constant 0 : index
    %12 = vector.load %arg3[%c0_5, %c0_6] : memref<4x64xf32, #tpu.memory_space<vmem>>, vector<4x64xf32>
    %cst_7 = arith.constant dense<0.000000e+00> : vector<4x8xf32>
    %13 = tpu.matmul %12, %11, %cst_7 {dimension_numbers = #tpu.dot_dimension_numbers<[1], [0], [0], [1], [0, 0, 1, 1], [], []>} : vector<4x64xf32>, vector<64x8xf32>, vector<4x8xf32> -> vector<4x8xf32>
    %14 = tpu.iota {dimensions = array<i32: 0>} : vector<4x8xi32>
    %c1_i32 = arith.constant 1 : i32
    %15 = vector.broadcast %c1_i32 : i32 to vector<4x8xi32>
    %16 = arith.cmpi sge, %14, %15 : vector<4x8xi32>
    %cst_8 = arith.constant 0.000000e+00 : f32
    %17 = vector.broadcast %cst_8 : f32 to vector<4x8xf32>
    %18 = arith.cmpf olt, %13, %17 : vector<4x8xf32>
    %19 = arith.andi %16, %18 : vector<4x8xi1>
    %cst_9 = arith.constant 2.000000e-01 : f32
    %20 = vector.broadcast %cst_9 : f32 to vector<4x8xf32>
    %21 = arith.mulf %20, %13 : vector<4x8xf32>
    %22 = arith.select %19, %21, %13 : vector<4x8xi1>, vector<4x8xf32>
    %c0_10 = arith.constant 0 : index
    %c0_11 = arith.constant 0 : index
    %23 = vector.load %arg4[%c0_10, %c0_11] : memref<4x8xf32, #tpu.memory_space<vmem>>, vector<4x8xf32>
    tpu.vector_store %arg4[%c0_10, %c0_11], %22 {strides = array<i32>} : memref<4x8xf32, #tpu.memory_space<vmem>>, vector<4x8xf32>,
    return
  }
  func.func @transform_0(%arg0: i32) -> (i32, i32) {
    %c0_i32 = arith.constant 0 : i32
    %c0_i32_0 = arith.constant 0 : i32
    return %c0_i32, %arg0 : i32, i32
  }
  func.func @transform_1(%arg0: i32) -> (i32, i32) {
    %c0_i32 = arith.constant 0 : i32
    %c0_i32_0 = arith.constant 0 : i32
    %c0_i32_1 = arith.constant 0 : i32
    return %c0_i32, %c0_i32_0 : i32, i32
  }
  func.func @transform_2(%arg0: i32) -> (i32, i32) {
    %c0_i32 = arith.constant 0 : i32
    %c0_i32_0 = arith.constant 0 : i32
    %c0_i32_1 = arith.constant 0 : i32
    return %c0_i32, %c0_i32_0 : i32, i32
  }
  func.func @transform_3(%arg0: i32) -> (i32, i32) {
    %c0_i32 = arith.constant 0 : i32
    %c0_i32_0 = arith.constant 0 : i32
    return %c0_i32, %arg0 : i32, i32
  }
}

</mosaic_0001>

<bundles_post_ra>
// kernel: tpu_custom_call.1
= control target key start
LH: loop header
LB: loop body
LE: loop exit
PB: predicated region body
PF: predicated region fallthrough
CT: control target
= control target key end

     0   :  { %vm51_vm0 = vcmask 1041408   ;;  %vm26_vm1 = vcmask 146432   ;;  %s304_s0 = inlined_call_operand.vmem [shape: f32[18,8], index: 0, kind: input, shape index: {}]   ;;  %s305_s1 = inlined_call_operand.vmem [shape: f32[64,18], index: 1, kind: input, shape index: {}]   ;;  %s306_s2 = inlined_call_operand.vmem [shape: f32[4,64], index: 2, kind: input, shape index: {}]   ;;  %s307_s3 = inlined_call_operand.hbm [shape: f32[4,8], index: 3, kind: output, shape index: {}]  }
   0x1   :  { %v25_v0 = vld [vmem:[%s304_s0 + $0x10] sm:$0x3]  ;;  %v24_v1 = vld [vmem:[%s304_s0 + $0x8] sm:$0xff]  ;;  %v23_v2 = vld [vmem:[%s304_s0] sm:$0xff] }
   0x2   :  { %203 = vmatpush.msk.msra.mxu2 %vm51_vm0, %v25_v0  ;;  %204 = vmatpush.msk.msra.mxu3 %vm51_vm0, %v25_v0  ;;  %v18_v3 = vld [vmem:[%s305_s1 + $0x18] sm:$0xff]  ;;  %v21_v4 = vld [vmem:[%s305_s1 + $0x30] sm:$0xff] }
   0x3   :  { %193 = vmatpush.msk.msra.mxu0 %vm51_vm0, %v25_v0 }
   0x4   :  { %205 = vmatpush.msra.mxu2 %v24_v1  ;;  %206 = vmatpush.msra.mxu3 %v24_v1 }
   0x5   :  { %8 = vsyncpa [#allocation3], 0  ;;  %69 = vmatpush.msra.mxu0 %v24_v1  ;;  %v15_v5 = vld [vmem:[%s305_s1] sm:$0xff]  ;;  %v22_v7 = vld [vmem:[%s305_s1 + $0x38] sm:$0xff]  ;;  %vm146_vm8 = vcmask 523264   ;;  %v96_v32 = vlaneseq  ;;  %s236_s7 = smov [#allocation2]  }
   0x6   :  { %207 = vmatpush.msra.mxu2 %v23_v2  ;;  %208 = vmatpush.msra.mxu3 %v23_v2  ;;  %v19_v6 = vld [vmem:[%s305_s1 + $0x20] sm:$0xff]  ;;  %v16_v8 = vld [vmem:[%s305_s1 + $0x8] sm:$0xff]  ;;  %v17_v10 = vld [vmem:[%s305_s1 + $0x10] sm:$0xff]  ;;  %s182_s8 = sshll.u32 %s236_s7, 4  ;;  %s184_s11 = sshll.u32 %s307_s3, 4  ;;  %vm175_vm11 = vcmask 60416   ;;  %s183_s8 = int_to_ptr.vmem [resolvable:$true] %s182_s8  ;;  %s185_s11 = int_to_ptr.hbm [resolvable:$true] %s184_s11 }
   0x7   :  { %197 = vmatmul.msk.f32.vlgmr.msra.gmra.mxu2 %vm26_vm1, %v18_v3  ;;  %200 = vmatmul.msk.f32.vlgmr.msra.gmra.mxu3 %vm26_vm1, %v21_v4  ;;  %v20_v9 = vld [vmem:[%s305_s1 + $0x28] sm:$0xff]  ;;  %v145_v31 = vld [vmem:[%s306_s2] sm:$0xf]  ;;  %v97_v33 = vshrl.u32 %v96_v32, 7 }
   0x8   :  { %70 = vmatpush.msra.mxu0 %v23_v2 }
   0x9   :  { %194 = vmatmul.msk.f32.vlgmr.msra.gmra.mxu0 %vm26_vm1, %v15_v5  ;;  %vm170_vm9 = vcmp.ge.s32.totalorder %v97_v33, 1 }
   0xf   :  { %198 = vmatmul.msk.f32.gmra.mxu2 %vm26_vm1, %v19_v6  ;;  %201 = vmatmul.msk.f32.gmra.mxu3 %vm26_vm1, %v22_v7 }
  0x11   :  { %195 = vmatmul.msk.f32.gmra.mxu0 %vm26_vm1, %v16_v8 }
  0x17   :  { %199 = vmatmul.msk.f32.gmra.mxu2 %vm26_vm1, %v20_v9 }
  0x19   :  { %196 = vmatmul.msk.f32.gmra.mxu0 %vm26_vm1, %v17_v10 }
  0x86   :  { %v72_v11 = vpop.f32.mrf.mxu0 }
  0x8a   :  { %v81_v12 = vpop.f32.mrf.mxu2  ;;  %v90_v13 = vpop.f32.mrf.mxu3 }
  0x8b   :  { %v135_v17 = vmul.f32 0.2, %v90_v13  ;;  %vm119_vm3 = vcmp.lt.f32.partialorder %v90_v13, 0.0  ;;  %v132_v25 = vmul.f32 0.2, %v81_v12  ;;  %vm116_vm6 = vcmp.lt.f32.partialorder %v81_v12, 0.0 }
  0x8d   :  { %v143_v20 = vsel %vm119_vm3, %v135_v17, %v90_v13  ;;  %v140_v29 = vsel %vm116_vm6, %v132_v25, %v81_v12 }
  0x8e   :  { %v75_v14 = vpop.f32.mrf.mxu0 }
  0x92   :  { %v84_v15 = vpop.f32.mrf.mxu2  ;;  %v93_v16 = vpop.f32.mrf.mxu3 }
  0x93   :  { %vm120_vm2 = vcmp.lt.f32.partialorder %v93_v16, 0.0  ;;  %v136_v18 = vmul.f32 0.2, %v93_v16  ;;  %v133_v22 = vmul.f32 0.2, %v84_v15  ;;  %vm117_vm5 = vcmp.lt.f32.partialorder %v84_v15, 0.0 }
  0x95   :  { %v144_v19 = vsel %vm120_vm2, %v136_v18, %v93_v16  ;;  %v141_v28 = vsel %vm117_vm5, %v133_v22, %v84_v15 }
  0x96   :  { %158 = vmatpush.msra.mxu1 %v144_v19  ;;  %v78_v24 = vpop.f32.mrf.mxu0 }
  0x97   :  { %v131_v27 = vmul.f32 0.2, %v78_v24  ;;  %vm115_vm7 = vcmp.lt.f32.partialorder %v78_v24, 0.0 }
  0x98   :  { %159 = vmatpush.msra.mxu1 %v143_v20 }
  0x99   :  { %v139_v30 = vsel %vm115_vm7, %v131_v27, %v78_v24 }
  0x9a   :  { %v87_v21 = vpop.f32.mrf.mxu2 }
  0x9b   :  { %vm118_vm4 = vcmp.lt.f32.partialorder %v87_v21, 0.0  ;;  %v134_v23 = vmul.f32 0.2, %v87_v21 }
  0x9d   :  { %v142_v26 = vsel %vm118_vm4, %v134_v23, %v87_v21 }
  0x9e   :  { %160 = vmatpush.msra.mxu1 %v142_v26 }
  0xa0   :  { %161 = vmatpush.msra.mxu1 %v141_v28 }
  0xa2   :  { %162 = vmatpush.msra.mxu1 %v140_v29 }
  0xa4   :  { %163 = vmatpush.msra.mxu1 %v139_v30 }
  0xa6   :  { %164 = vmatpush.msra.mxu1 %v75_v14 }
  0xa8   :  { %165 = vmatpush.msra.mxu1 %v72_v11 }
  0xa9   :  { %202 = vmatmul.msk.f32.vlgmr.msra.gmra.mxu1 %vm146_vm8, %v145_v31 }
 0x126   :  { %v167_v34 = vpop.f32.mrf.mxu1 }
 0x127   :  { %vm171_vm10 = vcmp.lt.f32.partialorder %v167_v34, 0.0  ;;  %v173_v35 = vmul.f32 0.2, %v167_v34 }
 0x128   :  { %vm172_vm12 = vmand %vm170_vm9, %vm171_vm10 }
 0x129   :  { %v174_v36 = vsel %vm172_vm12, %v173_v35, %v167_v34 }
 0x12a   :  { %176 = vst.msk [vmem:[#allocation2] sm:$0xf] %vm175_vm11, %v174_v36 }
 0x12b   :  { %187 = dma.vmem_to_hbm [thread:$0]  %s183_s8, 64, %s185_s11, [#allocation3]  }
 0x12c   :  { %234 = dma.done.wait [#allocation3], 64  }
 0x12d   :  { %235 = vsyncadd [#allocation3], 4294967232 }
 0x12e   :  { %192 = vsyncpa [#allocation3], 1 }

</bundles_post_ra>
